<compile_context>
chip_gen: v5e
topology: v5e:2x2
jax: 0.10.0
libtpu: 0.0.40
codegen_flags: <defaults>
</compile_context>

<pallas_src>
import functools

import jax
import jax.numpy as jnp
import numpy as np
from jax import lax
from jax.experimental import pallas as pl
from jax.experimental.pallas import tpu as pltpu


def _round_up(a, m):
    return -(-a // m) * m


def _patch_embed_kernel(p_ref, w_ref, pgb_ref, o_ref, *, eps, inv_e):
    """One row-tile per grid step.

    p_ref  : (Rt, Kdim)  flattened patches (rows of B*num_patches), bf16
    w_ref  : (Kdim, E)   projection weight (Conv2d weight reshaped), bf16
    pgb_ref: (3, E)      row 0 = proj bias, row 1 = LN gamma, row 2 = LN beta (f32)
    o_ref  : (Rt, E)     normalized patch embeddings
    """
    # Projection on the MXU, f32 accumulation; bias add in f32.
    y = jnp.dot(p_ref[...], w_ref[...], preferred_element_type=jnp.float32)
    y = y + pgb_ref[0:1, :]
    # One-pass LayerNorm over the embedding (last) axis, all f32.
    mean = jnp.sum(y, axis=-1, keepdims=True) * inv_e
    var = jnp.sum(y * y, axis=-1, keepdims=True) * inv_e - mean * mean
    inv = lax.rsqrt(var + eps)
    o_ref[...] = ((y - mean) * inv * pgb_ref[1:2, :] + pgb_ref[2:3, :]).astype(o_ref.dtype)


def patch_embed(x, params, *, patch_size, eps=1e-5,
                mxu_dtype=jnp.bfloat16, out_dtype=jnp.float32, row_tile=1024):
    """x: (B, C, H, W).  Returns (B, num_patches, embed_dim) in out_dtype."""
    B, C, H, W = x.shape
    ph, pw = (patch_size, patch_size) if isinstance(patch_size, int) else patch_size
    assert H % ph == 0 and W % pw == 0, "image size must be divisible by patch size"
    Hp, Wp = H // ph, W // pw
    E = params["proj_w"].shape[0]
    Kdim = C * ph * pw
    N = B * Hp * Wp

    # ---- layout glue (XLA side): gather non-overlapping patches, already bf16.
    # (B, C, H, W) -> (B, Hp, Wp, C, ph, pw) -> (N, C*ph*pw); matches Conv2d's
    # (c, kh, kw) weight ordering.
    # TODO(synk): fuse this im2col transpose into the kernel (grid over (B, Hp),
    # in-VMEM rearrangement) to save one HBM round trip of x.
    patches = (x.astype(mxu_dtype)
                 .reshape(B, C, Hp, ph, Wp, pw)
                 .transpose(0, 2, 4, 1, 3, 5)
                 .reshape(N, Kdim))
    w = params["proj_w"].reshape(E, Kdim).T.astype(mxu_dtype)          # (Kdim, E)
    pgb = jnp.stack([params["proj_b"], params["ln_w"], params["ln_b"]],
                    axis=0).astype(jnp.float32)                        # (3, E)

    # ---- row-tile selection --------------------------------------------------
    lhs_bytes = jnp.dtype(mxu_dtype).itemsize
    out_bytes = jnp.dtype(out_dtype).itemsize
    Rt = min(row_tile, _round_up(N, 8))

    # VMEM budget guard: double-buffered LHS + output tiles, single weight +
    # bias pack; stay well under v7x's 32 MiB default scoped VMEM.
    def _vmem(rt):
        return (2 * rt * (Kdim * lhs_bytes + E * out_bytes)
                + 2 * Kdim * E * lhs_bytes + 2 * 3 * E * 4)
    while Rt > 8 and _vmem(Rt) > 24 * 1024 * 1024:
        Rt = max(8, _round_up(Rt // 2, 8))

    # Keep >= 2 grid steps so the "parallel" row axis can split across v7x's
    # two TensorCores (harmless on single-TC v5e/v6e).
    if pl.cdiv(N, Rt) < 2 and N >= 16:
        Rt = _round_up(pl.cdiv(N, 2), 8)

    grid = (pl.cdiv(N, Rt),)   # ragged last block: OOB reads, masked writes

    kernel = functools.partial(_patch_embed_kernel, eps=float(eps), inv_e=1.0 / E)

    cost = pl.CostEstimate(
        flops=2 * N * Kdim * E,
        transcendentals=0,
        bytes_accessed=(N * Kdim * lhs_bytes + Kdim * E * lhs_bytes
                        + N * E * out_bytes + 3 * E * 4),
    )

    out = pl.pallas_call(
        kernel,
        out_shape=jax.ShapeDtypeStruct((N, E), out_dtype),
        grid=grid,
        in_specs=[
            pl.BlockSpec((Rt, Kdim), lambda i: (i, 0)),   # patches row tile
            pl.BlockSpec((Kdim, E), lambda i: (0, 0)),    # weight (constant)
            pl.BlockSpec((3, E), lambda i: (0, 0)),       # bias/gamma/beta pack
        ],
        out_specs=pl.BlockSpec((Rt, E), lambda i: (i, 0)),
        compiler_params=pltpu.CompilerParams(dimension_semantics=("parallel",)),
        cost_estimate=cost,
    )(patches, w, pgb)

    return out.reshape(B, Hp * Wp, E)


def _reference(x, params, patch_size, eps, mxu_dtype):
    """Pure-JAX mirror of the torch forward pass (independent code path)."""
    ph, pw = patch_size
    y = lax.conv_general_dilated(
        x.astype(mxu_dtype), params["proj_w"].astype(mxu_dtype),
        window_strides=(ph, pw), padding="VALID",
        dimension_numbers=("NCHW", "OIHW", "NCHW"),
        preferred_element_type=jnp.float32)
    y = y + params["proj_b"].astype(jnp.float32)[None, :, None, None]
    B, E, Hp, Wp = y.shape
    y = y.reshape(B, E, Hp * Wp).transpose(0, 2, 1)                   # (B, Np, E)
    mean = y.mean(-1, keepdims=True)
    var = ((y - mean) ** 2).mean(-1, keepdims=True)
    yn = (y - mean) / jnp.sqrt(var + eps)
    return yn * params["ln_w"][None, None, :] + params["ln_b"][None, None, :]


if __name__ == "__main__":
    # Small shapes consistent with the module: 16x16 image, 4x4 patches,
    # 4 input channels, 128-dim embedding (lane-dense output).
    B, C, H, W = 2, 4, 16, 16
    P, E = 4, 128
    fan_in = C * P * P

    key = jax.random.PRNGKey(0)
    k1, k2, k3, k4, k5 = jax.random.split(key, 5)
    x = jax.random.normal(k1, (B, C, H, W), dtype=jnp.float32)
    params = dict(
        proj_w=jax.random.normal(k2, (E, C, P, P), dtype=jnp.float32) / np.sqrt(fan_in),
        proj_b=0.05 * jax.random.normal(k3, (E,), dtype=jnp.float32),
        ln_w=1.0 + 0.1 * jax.random.normal(k4, (E,), dtype=jnp.float32),
        ln_b=0.1 * jax.random.normal(k5, (E,), dtype=jnp.float32),
    )

    out = patch_embed(x, params, patch_size=P)
    out = jax.block_until_ready(out)
    assert out.shape == (B, (H // P) * (W // P), E)

    ref = _reference(x, params, (P, P), 1e-5, jnp.bfloat16)
    np.testing.assert_allclose(np.asarray(out), np.asarray(ref),
                               rtol=2e-3, atol=2e-3)
    print("KERNEL_OK")
</pallas_src>

<mosaic_0001>
module attributes {stable_mosaic.version = 11 : i64} {
  func.func @_patch_embed_kernel(%arg0: i32, %arg1: memref<16x64xbf16, #tpu.memory_space<vmem>>, %arg2: memref<64x128xbf16, #tpu.memory_space<vmem>>, %arg3: memref<3x128xf32, #tpu.memory_space<vmem>>, %arg4: memref<16x128xf32, #tpu.memory_space<vmem>>) attributes {dimension_semantics = [#tpu.dimension_semantics<parallel>], iteration_bounds = array<i64: 2>, scalar_prefetch = 0 : i64, scratch_operands = 0 : i64, tpu.core_type = #tpu.core_type<tc>, window_params = [{transform_indices = @transform_0, window_bounds = array<i64: 16, 64>}, {pipeline_mode = #tpu.pipeline_mode<synchronous>, transform_indices = @transform_1, window_bounds = array<i64: 64, 128>}, {pipeline_mode = #tpu.pipeline_mode<synchronous>, transform_indices = @transform_2, window_bounds = array<i64: 3, 128>}, {transform_indices = @transform_3, window_bounds = array<i64: 16, 128>}]} {
    %c0 = arith.constant 0 : index
    %c0_0 = arith.constant 0 : index
    %0 = vector.load %arg1[%c0, %c0_0] : memref<16x64xbf16, #tpu.memory_space<vmem>>, vector<16x64xbf16>
    %c0_1 = arith.constant 0 : index
    %c0_2 = arith.constant 0 : index
    %1 = vector.load %arg2[%c0_1, %c0_2] : memref<64x128xbf16, #tpu.memory_space<vmem>>, vector<64x128xbf16>
    %cst = arith.constant dense<0.000000e+00> : vector<16x128xf32>
    %2 = tpu.matmul %0, %1, %cst {dimension_numbers = #tpu.dot_dimension_numbers<[1], [0], [0], [1], [0, 0, 1, 1], [], []>} : vector<16x64xbf16>, vector<64x128xbf16>, vector<16x128xf32> -> vector<16x128xf32>
    %c0_3 = arith.constant 0 : index
    %c0_4 = arith.constant 0 : index
    %3 = vector.load %arg3[%c0_3, %c0_4] : memref<3x128xf32, #tpu.memory_space<vmem>>, vector<1x128xf32>
    %4 = vector.broadcast %3 : vector<1x128xf32> to vector<16x128xf32>
    %5 = arith.addf %2, %4 : vector<16x128xf32>
    %cst_5 = arith.constant dense<0.000000e+00> : vector<16xf32>
    %6 = vector.multi_reduction <add>, %5, %cst_5 [1] : vector<16x128xf32> to vector<16xf32>
    %7 = vector.shape_cast %6 : vector<16xf32> to vector<16x1xf32>
    %cst_6 = arith.constant 7.812500e-03 : f32
    %8 = vector.broadcast %cst_6 : f32 to vector<16x1xf32>
    %9 = arith.mulf %7, %8 : vector<16x1xf32>
    %10 = arith.mulf %5, %5 : vector<16x128xf32>
    %cst_7 = arith.constant dense<0.000000e+00> : vector<16xf32>
    %11 = vector.multi_reduction <add>, %10, %cst_7 [1] : vector<16x128xf32> to vector<16xf32>
    %12 = vector.shape_cast %11 : vector<16xf32> to vector<16x1xf32>
    %cst_8 = arith.constant 7.812500e-03 : f32
    %13 = vector.broadcast %cst_8 : f32 to vector<16x1xf32>
    %14 = arith.mulf %12, %13 : vector<16x1xf32>
    %15 = arith.mulf %9, %9 : vector<16x1xf32>
    %16 = arith.subf %14, %15 : vector<16x1xf32>
    %cst_9 = arith.constant 9.99999974E-6 : f32
    %17 = vector.broadcast %cst_9 : f32 to vector<16x1xf32>
    %18 = arith.addf %16, %17 : vector<16x1xf32>
    %19 = math.rsqrt %18 : vector<16x1xf32>
    %20 = vector.broadcast %9 : vector<16x1xf32> to vector<16x128xf32>
    %21 = arith.subf %5, %20 : vector<16x128xf32>
    %22 = vector.broadcast %19 : vector<16x1xf32> to vector<16x128xf32>
    %23 = arith.mulf %21, %22 : vector<16x128xf32>
    %c1 = arith.constant 1 : index
    %c0_10 = arith.constant 0 : index
    %24 = vector.load %arg3[%c1, %c0_10] : memref<3x128xf32, #tpu.memory_space<vmem>>, vector<1x128xf32>
    %25 = vector.broadcast %24 : vector<1x128xf32> to vector<16x128xf32>
    %26 = arith.mulf %23, %25 : vector<16x128xf32>
    %c2 = arith.constant 2 : index
    %c0_11 = arith.constant 0 : index
    %27 = vector.load %arg3[%c2, %c0_11] : memref<3x128xf32, #tpu.memory_space<vmem>>, vector<1x128xf32>
    %28 = vector.broadcast %27 : vector<1x128xf32> to vector<16x128xf32>
    %29 = arith.addf %26, %28 : vector<16x128xf32>
    %c0_12 = arith.constant 0 : index
    %c0_13 = arith.constant 0 : index
    %30 = vector.load %arg4[%c0_12, %c0_13] : memref<16x128xf32, #tpu.memory_space<vmem>>, vector<16x128xf32>
    tpu.vector_store %arg4[%c0_12, %c0_13], %29 {strides = array<i32>} : memref<16x128xf32, #tpu.memory_space<vmem>>, vector<16x128xf32>,
    return
  }
  func.func @transform_0(%arg0: i32) -> (i32, i32) {
    %c0_i32 = arith.constant 0 : i32
    %c0_i32_0 = arith.constant 0 : i32
    return %arg0, %c0_i32 : i32, i32
  }
  func.func @transform_1(%arg0: i32) -> (i32, i32) {
    %c0_i32 = arith.constant 0 : i32
    %c0_i32_0 = arith.constant 0 : i32
    %c0_i32_1 = arith.constant 0 : i32
    return %c0_i32, %c0_i32_0 : i32, i32
  }
  func.func @transform_2(%arg0: i32) -> (i32, i32) {
    %c0_i32 = arith.constant 0 : i32
    %c0_i32_0 = arith.constant 0 : i32
    %c0_i32_1 = arith.constant 0 : i32
    return %c0_i32, %c0_i32_0 : i32, i32
  }
  func.func @transform_3(%arg0: i32) -> (i32, i32) {
    %c0_i32 = arith.constant 0 : i32
    %c0_i32_0 = arith.constant 0 : i32
    return %arg0, %c0_i32 : i32, i32
  }
}

</mosaic_0001>

<bundles_post_ra>
// kernel: tpu_custom_call.1
= control target key start
LH: loop header
LB: loop body
LE: loop exit
PB: predicated region body
PF: predicated region fallthrough
CT: control target
= control target key end

     0   :  { %8 = vsyncpa [#allocation3], 0  ;;  %s906_s0 = inlined_call_operand.hbm [shape: bf16[32,64], index: 0, kind: input, shape index: {}]   ;;  %s907_s1 = inlined_call_operand.hbm [shape: bf16[64,128], index: 1, kind: input, shape index: {}]   ;;  %s908_s2 = inlined_call_operand.hbm [shape: f32[3,128], index: 2, kind: input, shape index: {}]   ;;  %s909_s3 = inlined_call_operand.hbm [shape: f32[32,128], index: 3, kind: output, shape index: {}]  }
   0x1   :  { %10 = vsyncpa [#allocation3 + $0x1], 0 }
   0x2   :  { %11 = vsyncpa [#allocation6], 0 }
   0x3   :  { %12 = vsyncpa [#allocation4], 0 }
   0x4   :  { %14 = vsyncpa [#allocation4 + $0x1], 0  ;;  %s758_s12 = smov 0   ;;  %s760_s13 = smov 0  }
   0x5   :  { %s762_s14 = smov 0   ;;  %s764_s15 = smov 0  }
   0x6 LB: > { %s779_s16 = sadd.s32 4294967295, %s730_s15   ;;  %s446_s17 = sadd.s32 4294967294, %s730_s15   ;;  %s730_s15 = sphi %s764_s15, %s919_s15   ;;  %s726_s14 = sphi %s762_s14, %s918_s14   ;;  %s722_s13 = sphi %s760_s13, %s917_s13   ;;  %s718_s12 = sphi %s758_s12, %s916_s12  }
   0x7   : > { %p40_p0 = scmp.ne.s32.totalorder %s722_s13, %s718_s12  ;;  %p41_p1 = scmp.eq.s32.totalorder %s779_s16, 0 }
   0x8   : > { %p106_p2 = scmp.eq.s32.totalorder %s779_s16, 1  ;;  %p112_p3 = scmp.eq.s32.totalorder %s446_s17, 1 }
   0x9   : > { %p788_p4 = por %p41_p1, %p40_p0  ;;  %p447_p5 = scmp.ge.s32.totalorder %s730_s15, 1 }
   0xa   : > { %p793_p6 = por %p112_p3, %p40_p0  ;;  %p119_p7 = scmp.lt.s32.totalorder %s730_s15, 3 }
   0xb   : > { %s130_s22 = sshll.u32 %s907_s1, 4  ;;  %s732_s24 = smov [#allocation5]   ;;  %s131_s22 = int_to_ptr.hbm [resolvable:$true] %s130_s22 }
   0xc   : > { %p801_p8 = pnand %p447_p5, %p119_p7  ;;  %s132_s25 = sshll.u32 %s732_s24, 4  ;;  %s133_s25 = int_to_ptr.vmem [resolvable:$true] %s132_s25 }
   0xd   : > { %s145_s28 = sshll.u32 %s908_s2, 4  ;;  %s733_s29 = smov 64   ;;  %s146_s28 = int_to_ptr.hbm [resolvable:$true] %s145_s28 }
   0xe   : > { %p504_p9 = pneg %p801_p8  ;;  %s734_s30 = smov 4  }
   0xf   : > { %s735_s4 = smov [#allocation7]   ;;  %s817_s6 = sadd.s32 1, %s730_s15  }
  0x10   : > { %p505_p10 = pnand %p504_p9, %p41_p1  ;;  %s147_s5 = sshll.u32 %s735_s4, 4  ;;  %s148_s5 = int_to_ptr.vmem [resolvable:$true] %s147_s5 }
  0x11   : > { %s27_s7 = sadd.s32 1, %s726_s14  ;;  %s24_s8 = ssub.s32 %s730_s15, %s817_s6 }
  0x12   : > { %507 = dma.hbm_to_vmem [thread:$0]  (!%p505_p10), %s131_s22, 512, %s133_s25, [#allocation6], %s733_s29, %s733_s29, %s734_s30  }
  0x13   : > { %510 = dma.hbm_to_vmem [thread:$0]  (!%p505_p10), %s146_s28, 64, %s148_s5, [#allocation6]  }
  0x14   : > { %p34_p12 = scmp.ne.s32.totalorder %s726_s14, %s722_s13  ;;  %p25_p13 = scmp.eq.s32.totalorder %s24_s8, 0 }
  0x15   : > { %p35_p0 = scmp.eq.s32.totalorder %s730_s15, 0  ;;  %p521_p5 = scmp.lt.s32.totalorder %s730_s15, 2 }
  0x16   : > { %p827_p3 = por %p106_p2, %p34_p12  ;;  %s158_s11 = sand.u32 1, %s726_s14  }
  0x17   : > { %s833_s10 = scalar_select %p25_p13, %s726_s14, %s27_s7  }
  0x18   : > { %p36_p7 = por %p35_p0, %p34_p12  ;;  %s451_s17 = sshll.u32 %s158_s11, 3 }
  0x19   : > { %s485_s20 = sshll.u32 %s730_s15, 3  ;;  %s162_s25 = scalar_lea.vmem [#allocation2], %s451_s17 }
  0x1a   : > { %s167_s24 = scalar_lea.hbm %s906_s0, %s485_s20  ;;  %s170_s26 = sshll.u32 %s162_s25, 4  ;;  %s171_s26 = int_to_ptr.vmem [resolvable:$true] %s170_s26 }
  0x1b   : > { %s168_s27 = sshll.u32 %s167_s24, 4  ;;  %p840_p2 = pnand %p521_p5, %p36_p7  ;;  %s169_s27 = int_to_ptr.hbm [resolvable:$true] %s168_s27 }
  0x1c   : > { %s159_s4 = scalar_lea.sflag [#allocation3], %s158_s11  ;;  %s630_s5 = sshra.s32 %s169_s27, 4  ;;  %s631_s5 = int_to_ptr.hbm [resolvable:$true] %s630_s5 }
  0x1d   : > { %s632_s7 = scalar_lea.hbm %s631_s5, 8  ;;  %p634_p10 = pneg %p840_p2 }
  0x1e   : > { %p633_p9 = scmp.ne.s32.totalorder %s631_s5, %s632_s7  ;;  %s637_s20 = scalar_lea.hbm %s906_s0, 16 }
  0x1f   : > { %p638_p0 = scmp.lt.s32.totalorder %s631_s5, %s906_s0  ;;  %p639_p5 = scmp.lt.s32.totalorder %s637_s20, %s632_s7 }
  0x20   : > { %p635_p12 = pnand %p634_p10, %p633_p9 }
  0x21   : > { %p640_p7 = por %p639_p5, %p638_p0 }
  0x22   : > { %p636_p13 = pneg %p635_p12 }
  0x24   : > { %p641_p11 = pnand %p640_p7, %p636_p13 }
  0x26   : > { %644 = shalt.err (!%p641_p11)
}
  0x27   : > { %514 = dma.hbm_to_vmem [thread:$0]  (!%p840_p2), %s169_s27, 128, %s171_s26, %s159_s4, %s733_s29, %s733_s29, %s734_s30  }
  0x28   : > { %182 = sbr.rel (%p801_p8) target bundleno = 352 (0x160), region = 32  ;;  %s860_s11 = sand.u32 (!%p801_p8), 1, %s722_s13  }
  0x29   : > { %s455_s24 = sshll.u32 (!%p801_p8), %s860_s11, 3  ;;  %s185_s25 = scalar_lea.sflag (!%p801_p8), [#allocation3], %s860_s11 }
  0x2a   : > { %s188_s5 = scalar_lea.vmem (!%p801_p8), [#allocation2], %s455_s24 }
  0x2d   : > { %705 = dma.done.wait (%p788_p4), %s185_s25, 128  }
  0x2e   : > { %707 = vsyncadd (%p788_p4), %s185_s25, 4294967168 }
  0x2f   : > { %709 = dma.done.wait (%p41_p1), [#allocation6], 576  }
  0x30   : > { %711 = vsyncadd (%p41_p1), [#allocation6], 4294966720  ;;  %v490_v0 = vld [vmem:[#allocation5 + $0x18] sm:$0xff]  ;;  %v489_v1 = vld [vmem:[#allocation5 + $0x10] sm:$0xff]  ;;  %vm266_vm0 = vcmask 523264   ;;  %s458_s18 = sshll.u32 %s860_s11, 4 }
  0x31   : > { %274 = vmatpush.bf16.msra.mxu0 %v490_v0  ;;  %v488_v2 = vld [vmem:[#allocation5 + $0x8] sm:$0xff]  ;;  %v487_v3 = vld [vmem:[#allocation5] sm:$0xff]  ;;  %v486_v4 = vld [vmem:[%s188_s5] sm:$0xff]  ;;  %s491_s23 = sshll.u32 %s779_s16, 4  ;;  %s221_s27 = scalar_lea.vmem [#allocation8], %s458_s18 }
  0x32   : > { %v563_v5 = vld [vmem:[#allocation7] ss:$0 sm:$0xff]  ;;  %v564_v35 = vld [vmem:[#allocation7 + $0x1] ss:$0 sm:$0xff]  ;;  %v565_v38 = vld [vmem:[#allocation7 + $0x2] ss:$0 sm:$0xff]  ;;  %s350_s26 = scalar_lea.hbm %s909_s3, %s491_s23 }
  0x33   : > { %s351_s28 = sshll.u32 %s221_s27, 4  ;;  %s353_s4 = sshll.u32 %s350_s26, 4  ;;  %s352_s28 = int_to_ptr.vmem [resolvable:$true] %s351_s28  ;;  %s354_s4 = int_to_ptr.hbm [resolvable:$true] %s353_s4 }
  0x34   : > { %s339_s16 = scalar_lea.sflag [#allocation4], %s860_s11  ;;  %s674_s7 = sshra.s32 %s354_s4, 4  ;;  %s675_s7 = int_to_ptr.hbm [resolvable:$true] %s674_s7 }
  0x35   : > { %275 = vmatpush.bf16.msra.mxu0 %v489_v1  ;;  %s676_s8 = scalar_lea.hbm %s675_s7, 16  ;;  %s680_s21 = scalar_lea.hbm %s909_s3, 32 }
  0x36   : > { %p677_p1 = scmp.ne.s32.totalorder %s675_s7, %s676_s8  ;;  %p681_p11 = scmp.lt.s32.totalorder %s675_s7, %s909_s3 }
  0x37   : > { %p682_p2 = scmp.lt.s32.totalorder %s680_s21, %s676_s8 }
  0x38   : > { %p678_p4 = pnand %p677_p1, %p827_p3 }
  0x39   : > { %276 = vmatpush.bf16.msra.mxu0 %v488_v2  ;;  %p683_p9 = por %p682_p2, %p681_p11 }
  0x3a   : > { %p679_p8 = pneg %p678_p4 }
  0x3c   : > { %p684_p10 = pnand %p683_p9, %p679_p8 }
  0x3d   : > { %277 = vmatpush.bf16.msra.mxu0 %v487_v3 }
  0x40   : > { %479 = vmatmul.msk.bf16.vlgmr.msra.gmra.mxu0 %vm266_vm0, %v486_v4 }
  0xbd   : > { %v279_v6 = vpop.f32.mrf.mxu0 }
  0xbe   : > { %v280_v7 = vadd.f32 %v563_v5, %v279_v6 }
  0xc0   : > { %284 = vadd.xlane.f32.xlu0 %v280_v7  ;;  %v290_v8 = vmul.f32 %v280_v7, %v280_v7 }
  0xc2   : > { %292 = vadd.xlane.f32.xlu1 %v290_v8 }
  0xc5   : > { %v281_v9 = vpop.f32.mrf.mxu0 }
  0xc6   : > { %v282_v10 = vadd.f32 %v563_v5, %v281_v9 }
  0xc8   : > { %286 = vadd.xlane.f32.xlu0 %v282_v10  ;;  %v291_v11 = vmul.f32 %v282_v10, %v282_v10 }
  0xca   : > { %294 = vadd.xlane.f32.xlu1 %v291_v11 }
 0x133   : > { %v285_v12 = vpop.xlane.xlu0 %284 }
 0x134   : > { %v288_v13 = vmul.f32 0.0078125, %v285_v12 }
 0x135   : > { %v293_v14 = vpop.xlane.xlu1 %292 }
 0x136   : > { %v298_v15 = vmul.f32 %v288_v13, %v288_v13  ;;  %v296_v16 = vmul.f32 0.0078125, %v293_v14  ;;  %v324_v34 = vsub.f32 %v280_v7, %v288_v13 }
 0x138   : > { %v300_v17 = vsub.f32 %v296_v16, %v298_v15 }
 0x13a   : > { %v302_v18 = vadd.f32 1e-05, %v300_v17 }
 0x13b   : > { %v287_v19 = vpop.xlane.xlu0 %286 }
 0x13c   : > { %566 = vrsqrt.f32 %v302_v18  ;;  %v289_v20 = vmul.f32 0.0078125, %v287_v19  ;;  %vm310_vm2 = vweird.f32 %v302_v18 }
 0x13d   : > { %v295_v21 = vpop.xlane.xlu1 %294 }
 0x13e   : > { %v299_v22 = vmul.f32 %v289_v20, %v289_v20  ;;  %v297_v23 = vmul.f32 0.0078125, %v295_v21  ;;  %v325_v45 = vsub.f32 %v282_v10, %v289_v20 }
 0x140   : > { %v301_v24 = vsub.f32 %v297_v23, %v299_v22 }
 0x142   : > { %v567_v25 = vpop.eup %566  ;;  %v303_v26 = vadd.f32 1e-05, %v301_v24 }
 0x143   : > { %v305_v27 = vmul.f32 %v567_v25, %v302_v18  ;;  %vm311_vm1 = vweird.f32 %v567_v25 }
 0x144   : > { %568 = vrsqrt.f32 %v303_v26  ;;  %vm312_vm3 = vmor %vm310_vm2, %vm311_vm1  ;;  %vm320_vm5 = vweird.f32 %v303_v26 }
 0x145   : > { %v306_v28 = vmul.f32 %v567_v25, %v305_v27 }
 0x147   : > { %v307_v29 = vmul.f32 0.5, %v306_v28 }
 0x149   : > { %v308_v30 = vsub.f32 1.5, %v307_v29 }
 0x14a   : > { %v569_v31 = vpop.eup %568 }
 0x14b   : > { %v309_v32 = vmul.f32 %v567_v25, %v308_v30  ;;  %v315_v33 = vmul.f32 %v569_v31, %v303_v26  ;;  %vm321_vm4 = vweird.f32 %v569_v31 }
 0x14c   : > { %vm322_vm6 = vmor %vm320_vm5, %vm321_vm4 }
 0x14d   : > { %v313_v36 = vsel %vm312_vm3, %v567_v25, %v309_v32  ;;  %v316_v37 = vmul.f32 %v569_v31, %v315_v33 }
 0x14e   : > { %v326_v39 = vmul.f32 %v324_v34, %v313_v36 }
 0x14f   : > { %v317_v40 = vmul.f32 0.5, %v316_v37 }
 0x150   : > { %v330_v41 = vmul.f32 %v564_v35, %v326_v39 }
 0x151   : > { %v318_v42 = vsub.f32 1.5, %v317_v40 }
 0x152   : > { %v334_v43 = vadd.f32 %v565_v38, %v330_v41 }
 0x153   : > { %v319_v44 = vmul.f32 %v569_v31, %v318_v42 }
 0x154   : > { %336 = vst [vmem:[%s221_s27] sm:$0xff] %v334_v43 }
 0x155   : > { %v323_v46 = vsel %vm322_vm6, %v569_v31, %v319_v44 }
 0x156   : > { %v327_v47 = vmul.f32 %v325_v45, %v323_v46 }
 0x158   : > { %v331_v48 = vmul.f32 %v564_v35, %v327_v47 }
 0x15a   : > { %v335_v49 = vadd.f32 %v565_v38, %v331_v48 }
 0x15c   : > { %337 = vst [vmem:[%s221_s27 + $0x8] sm:$0xff] %v335_v49 }
 0x15d   : > { %687 = shalt.err (!%p684_p10)
}
 0x15e   : > { %s736_s11 = smov 128   ;;  %s737_s25 = smov 8  }
 0x15f   : > { %502 = dma.vmem_to_hbm [thread:$0]  (%p827_p3), %s352_s28, 256, %s354_s4, %s339_s16, %s736_s11, %s736_s11, %s737_s25  }
 0x160 PF: > { %s368_s5 = sand.u32 1, %s718_s12   ;;  %p915_p12 = scmp.ge.s32.totalorder %s730_s15, 2 }
 0x161   : > { %s369_s18 = scalar_lea.sflag [#allocation4], %s368_s5 }
 0x162   : > { %p516_p13 = pnand %p915_p12, %p793_p6 }
 0x164   : > { %p517_p0 = pneg %p516_p13 }
 0x166   : > { %713 = dma.done.wait (%p517_p0), %s369_s18, 256  }
 0x167   : > { %715 = vsyncadd (%p517_p0), %s369_s18, 4294967040  ;;  %p17_p5 = scmp.ge.s32.totalorder %s817_s6, 4   ;;  %s916_s12 = smov %s722_s13 }
 0x168   : > { %s917_s13 = smov %s726_s14  ;;  %s918_s14 = smov %s833_s10 }
 0x169   : > { %s919_s15 = smov %s817_s6  ;;  %19 = sbr.rel (!%p17_p5) target bundleno = 6 (0x6), region = 85 }
 0x16e   :  { %375 = vsyncpa [#allocation3], 1 }
 0x16f   :  { %377 = vsyncpa [#allocation3 + $0x1], 1 }
 0x170   :  { %378 = vsyncpa [#allocation6], 1 }
 0x171   :  { %379 = vsyncpa [#allocation4], 1 }
 0x172   :  { %381 = vsyncpa [#allocation4 + $0x1], 1 }

</bundles_post_ra>
